<compile_context>
chip_gen: v6e
topology: v6e:2x2x1
jax: 0.10.0
libtpu: 0.0.40
codegen_flags: <defaults>
</compile_context>

<pallas_src>
import jax
import jax.numpy as jnp
from jax.experimental import pallas as pl
from jax.experimental.pallas import tpu as pltpu


def _channel_attention_kernel(w1_ref, w2_ref, x_ref, o_ref):
    # w1_ref : VMEM (Cr, C)  fc1 weight (f32)
    # w2_ref : VMEM (C, Cr)  fc2 weight (f32)
    # x_ref  : VMEM (C, S)   one batch element, S = D*H*W (lane axis)
    # o_ref  : VMEM (C, S)   output block
    C, S = x_ref.shape
    xf = x_ref[...].astype(jnp.float32)

    # Global spatial pooling -> per-channel scalars (lane reductions on XLU).
    avg = jnp.sum(xf, axis=1, keepdims=True) * jnp.float32(1.0 / S)   # (C, 1)
    mx = jnp.max(xf, axis=1, keepdims=True)                           # (C, 1)
    pooled = jnp.concatenate([avg, mx], axis=1)                       # (C, 2)

    # Shared MLP applied to both pooled branches at once (tiny MXU matmuls).
    h = jnp.dot(w1_ref[...], pooled, preferred_element_type=jnp.float32)   # (Cr, 2)
    h = jnp.maximum(h, 0.0)                                                # ReLU
    o = jnp.dot(w2_ref[...], h, preferred_element_type=jnp.float32)        # (C, 2)

    gate = jax.nn.sigmoid(o[:, 0:1] + o[:, 1:2])                      # (C, 1)
    o_ref[...] = (xf * gate).astype(o_ref.dtype)                      # broadcast over lanes


def channel_attention_3d(x, fc1_weight, fc2_weight):
    """x: (N, C, D, H, W); fc1_weight: (C//r, C, 1, 1, 1); fc2_weight: (C, C//r, 1, 1, 1)."""
    N, C, D, H, W = x.shape
    S = D * H * W
    Cr = fc1_weight.shape[0]

    w1 = fc1_weight.reshape(Cr, C).astype(jnp.float32)
    w2 = fc2_weight.reshape(C, Cr).astype(jnp.float32)
    x2d = x.reshape(N, C, S)  # lane-dense: S (multiple of 128 here) on the lane axis

    # NOTE: one (C, S) batch element lives in VMEM per grid step (double
    # buffered by the pipeline).  For very large C*D*H*W (v7x: 64 MiB VMEM),
    # switch to a two-pass variant: spatially-tiled accumulating pooling pass,
    # then a tiled gate-apply pass.
    grid_spec = pltpu.PrefetchScalarGridSpec(
        num_scalar_prefetch=0,
        grid=(N,),
        in_specs=[
            pl.BlockSpec((Cr, C), lambda n: (0, 0)),          # fc1 weight (resident)
            pl.BlockSpec((C, Cr), lambda n: (0, 0)),          # fc2 weight (resident)
            pl.BlockSpec((None, C, S), lambda n: (n, 0, 0)),  # x, one batch / step
        ],
        out_specs=pl.BlockSpec((None, C, S), lambda n: (n, 0, 0)),
    )

    out = pl.pallas_call(
        _channel_attention_kernel,
        out_shape=jax.ShapeDtypeStruct((N, C, S), x.dtype),
        grid_spec=grid_spec,
        compiler_params=pltpu.CompilerParams(dimension_semantics=("parallel",)),
    )(w1, w2, x2d)
    return out.reshape(N, C, D, H, W)


def channel_attention_3d_ref(x, fc1_weight, fc2_weight):
    """Pure-JAX reference mirroring the PyTorch forward."""
    Cr, C = fc1_weight.shape[:2]
    w1 = fc1_weight.reshape(Cr, C)
    w2 = fc2_weight.reshape(C, Cr)

    def mlp(p):  # p: (N, C)
        h = jnp.maximum(p @ w1.T, 0.0)
        return h @ w2.T

    avg = jnp.mean(x, axis=(2, 3, 4))
    mx = jnp.max(x, axis=(2, 3, 4))
    gate = jax.nn.sigmoid(mlp(avg) + mlp(mx))
    return x * gate[:, :, None, None, None]


if __name__ == "__main__":
    key = jax.random.PRNGKey(0)
    kx, k1, k2 = jax.random.split(key, 3)

    # Small shapes consistent with the module: S = D*H*W = 512 (lane-dense).
    N, C, D, H, W = 2, 32, 4, 8, 16
    reduction = 16
    Cr = C // reduction  # = 2

    x = jax.random.normal(kx, (N, C, D, H, W), dtype=jnp.float32)
    # Deterministic synthetic weights in PyTorch Conv3d (out, in, 1, 1, 1) shape.
    fc1_w = 0.1 * jax.random.normal(k1, (Cr, C, 1, 1, 1), dtype=jnp.float32)
    fc2_w = 0.1 * jax.random.normal(k2, (C, Cr, 1, 1, 1), dtype=jnp.float32)

    out = channel_attention_3d(x, fc1_w, fc2_w)
    out = jax.block_until_ready(out)

    ref = channel_attention_3d_ref(x, fc1_w, fc2_w)
    assert out.shape == x.shape and out.dtype == x.dtype
    max_err = float(jnp.max(jnp.abs(out - ref)))
    assert max_err < 1e-4, f"max abs error too large: {max_err}"

    print("KERNEL_OK")
</pallas_src>

<mosaic_0001>
module attributes {stable_mosaic.version = 11 : i64} {
  func.func @_channel_attention_kernel(%arg0: i32, %arg1: memref<2x32xf32, #tpu.memory_space<vmem>>, %arg2: memref<32x2xf32, #tpu.memory_space<vmem>>, %arg3: memref<1x32x512xf32, #tpu.memory_space<vmem>>, %arg4: memref<1x32x512xf32, #tpu.memory_space<vmem>>) attributes {dimension_semantics = [#tpu.dimension_semantics<parallel>], iteration_bounds = array<i64: 2>, scalar_prefetch = 0 : i64, scratch_operands = 0 : i64, tpu.core_type = #tpu.core_type<tc>, window_params = [{pipeline_mode = #tpu.pipeline_mode<synchronous>, transform_indices = @transform_0, window_bounds = array<i64: 2, 32>}, {pipeline_mode = #tpu.pipeline_mode<synchronous>, transform_indices = @transform_1, window_bounds = array<i64: 32, 2>}, {transform_indices = @transform_2, window_bounds = array<i64: 1, 32, 512>}, {transform_indices = @transform_3, window_bounds = array<i64: 1, 32, 512>}]} {
    %c0 = arith.constant 0 : index
    %c0_0 = arith.constant 0 : index
    %c0_1 = arith.constant 0 : index
    %0 = vector.load %arg3[%c0, %c0_0, %c0_1] : memref<1x32x512xf32, #tpu.memory_space<vmem>>, vector<1x32x512xf32>
    %1 = vector.shape_cast %0 : vector<1x32x512xf32> to vector<32x512xf32>
    %cst = arith.constant dense<0.000000e+00> : vector<32xf32>
    %2 = vector.multi_reduction <add>, %1, %cst [1] : vector<32x512xf32> to vector<32xf32>
    %3 = vector.shape_cast %2 : vector<32xf32> to vector<32x1xf32>
    %cst_2 = arith.constant 0.001953125 : f32
    %4 = vector.broadcast %cst_2 : f32 to vector<32x1xf32>
    %5 = arith.mulf %3, %4 : vector<32x1xf32>
    %cst_3 = arith.constant dense<0xFF800000> : vector<32xf32>
    %6 = vector.multi_reduction <maximumf>, %1, %cst_3 [1] : vector<32x512xf32> to vector<32xf32>
    %7 = vector.shape_cast %6 : vector<32xf32> to vector<32x1xf32>
    %8 = tpu.concatenate %5, %7 in 1 : vector<32x1xf32>, vector<32x1xf32> -> vector<32x2xf32>
    %c0_4 = arith.constant 0 : index
    %c0_5 = arith.constant 0 : index
    %9 = vector.load %arg1[%c0_4, %c0_5] : memref<2x32xf32, #tpu.memory_space<vmem>>, vector<2x32xf32>
    %cst_6 = arith.constant dense<0.000000e+00> : vector<2x2xf32>
    %10 = tpu.matmul %9, %8, %cst_6 {dimension_numbers = #tpu.dot_dimension_numbers<[1], [0], [0], [1], [0, 0, 1, 1], [], []>} : vector<2x32xf32>, vector<32x2xf32>, vector<2x2xf32> -> vector<2x2xf32>
    %cst_7 = arith.constant 0.000000e+00 : f32
    %11 = vector.broadcast %cst_7 : f32 to vector<2x2xf32>
    %12 = arith.maximumf %10, %11 : vector<2x2xf32>
    %c0_8 = arith.constant 0 : index
    %c0_9 = arith.constant 0 : index
    %13 = vector.load %arg2[%c0_8, %c0_9] : memref<32x2xf32, #tpu.memory_space<vmem>>, vector<32x2xf32>
    %cst_10 = arith.constant dense<0.000000e+00> : vector<32x2xf32>
    %14 = tpu.matmul %13, %12, %cst_10 {dimension_numbers = #tpu.dot_dimension_numbers<[1], [0], [0], [1], [0, 0, 1, 1], [], []>} : vector<32x2xf32>, vector<2x2xf32>, vector<32x2xf32> -> vector<32x2xf32>
    %15 = vector.extract_strided_slice %14 {offsets = [0, 0], sizes = [32, 1], strides = [1, 1]} : vector<32x2xf32> to vector<32x1xf32>
    %16 = vector.extract_strided_slice %14 {offsets = [0, 1], sizes = [32, 1], strides = [1, 1]} : vector<32x2xf32> to vector<32x1xf32>
    %17 = arith.addf %15, %16 : vector<32x1xf32>
    %18 = arith.negf %17 : vector<32x1xf32>
    %19 = math.exp %18 : vector<32x1xf32>
    %cst_11 = arith.constant 1.000000e+00 : f32
    %20 = vector.broadcast %cst_11 : f32 to vector<32x1xf32>
    %21 = arith.addf %20, %19 : vector<32x1xf32>
    %22 = arith.divf %20, %21 : vector<32x1xf32>
    %23 = vector.broadcast %22 : vector<32x1xf32> to vector<32x512xf32>
    %24 = arith.mulf %1, %23 : vector<32x512xf32>
    %c0_12 = arith.constant 0 : index
    %c0_13 = arith.constant 0 : index
    %c0_14 = arith.constant 0 : index
    %25 = vector.load %arg4[%c0_12, %c0_13, %c0_14] : memref<1x32x512xf32, #tpu.memory_space<vmem>>, vector<1x32x512xf32>
    %26 = vector.shape_cast %25 : vector<1x32x512xf32> to vector<32x512xf32>
    %27 = vector.shape_cast %24 : vector<32x512xf32> to vector<1x32x512xf32>
    tpu.vector_store %arg4[%c0_12, %c0_13, %c0_14], %27 {strides = array<i32>} : memref<1x32x512xf32, #tpu.memory_space<vmem>>, vector<1x32x512xf32>,
    return
  }
  func.func @transform_0(%arg0: i32) -> (i32, i32) {
    %c0_i32 = arith.constant 0 : i32
    %c0_i32_0 = arith.constant 0 : i32
    %c0_i32_1 = arith.constant 0 : i32
    return %c0_i32, %c0_i32_0 : i32, i32
  }
  func.func @transform_1(%arg0: i32) -> (i32, i32) {
    %c0_i32 = arith.constant 0 : i32
    %c0_i32_0 = arith.constant 0 : i32
    %c0_i32_1 = arith.constant 0 : i32
    return %c0_i32, %c0_i32_0 : i32, i32
  }
  func.func @transform_2(%arg0: i32) -> (i32, i32, i32) {
    %c0_i32 = arith.constant 0 : i32
    %c0_i32_0 = arith.constant 0 : i32
    %c0_i32_1 = arith.constant 0 : i32
    return %arg0, %c0_i32, %c0_i32_0 : i32, i32, i32
  }
  func.func @transform_3(%arg0: i32) -> (i32, i32, i32) {
    %c0_i32 = arith.constant 0 : i32
    %c0_i32_0 = arith.constant 0 : i32
    %c0_i32_1 = arith.constant 0 : i32
    return %arg0, %c0_i32, %c0_i32_0 : i32, i32, i32
  }
}

</mosaic_0001>

<bundles_post_ra>
// kernel: tpu_custom_call.1
= control target key start
LH: loop header
LB: loop body
LE: loop exit
PB: predicated region body
PF: predicated region fallthrough
CT: control target
= control target key end

     0   :  { %8 = vsyncpa [#allocation3], 0  ;;  %s1164_s0 = inlined_call_operand.vmem [shape: f32[2,32], index: 0, kind: input, shape index: {}]   ;;  %s1165_s1 = inlined_call_operand.vmem [shape: f32[32,2], index: 1, kind: input, shape index: {}]   ;;  %s1166_s2 = inlined_call_operand.hbm [shape: f32[2,32,512], index: 2, kind: input, shape index: {}]   ;;  %s1167_s3 = inlined_call_operand.hbm [shape: f32[2,32,512], index: 3, kind: output, shape index: {}]  }
   0x1   :  { %10 = vsyncpa [#allocation3 + $0x1], 0 }
   0x2   :  { %11 = vsyncpa [#allocation4], 0 }
   0x3   :  { %13 = vsyncpa [#allocation4 + $0x1], 0  ;;  %s870_s12 = smov 0   ;;  %s872_s13 = smov 0  }
   0x4   :  { %s874_s14 = smov 0   ;;  %s876_s15 = smov 0  }
   0x5 LB: > { %s891_s16 = sadd.s32 4294967295, %s838_s15   ;;  %s619_s17 = sadd.s32 4294967294, %s838_s15   ;;  %s838_s15 = sphi %s876_s15, %s1182_s15   ;;  %s834_s14 = sphi %s874_s14, %s1181_s14   ;;  %s830_s13 = sphi %s872_s13, %s1180_s13   ;;  %s826_s12 = sphi %s870_s12, %s1179_s12  }
   0x6   : > { %s895_s18 = sadd.s32 1, %s838_s15   ;;  %s68_s19 = sadd.s32 1, %s834_s14 }
   0x7   : > { %s65_s20 = ssub.s32 %s838_s15, %s895_s18  ;;  %p75_p0 = scmp.ne.s32.totalorder %s834_s14, %s830_s13 }
   0x8   : > { %p66_p1 = scmp.eq.s32.totalorder %s65_s20, 0  ;;  %p76_p2 = scmp.eq.s32.totalorder %s838_s15, 0 }
   0x9   : > { %p81_p3 = scmp.ne.s32.totalorder %s830_s13, %s826_s12  ;;  %p82_p4 = scmp.eq.s32.totalorder %s891_s16, 0 }
   0xa   : > { %s907_s21 = scalar_select %p66_p1, %s834_s14, %s68_s19  }
   0xb   : > { %p909_p5 = por %p76_p2, %p75_p0  ;;  %p913_p6 = por %p82_p4, %p81_p3 }
   0xc   : > { %p105_p7 = scmp.eq.s32.totalorder %s891_s16, 1  ;;  %p111_p8 = scmp.eq.s32.totalorder %s619_s17, 1 }
   0xd   : > { %s1171_s23 = scalar_select %p913_p6, 1, 0 }
   0xe   : > { %p686_p10 = scmp.lt.s32.totalorder %s838_s15, 2  ;;  %p920_p11 = por %p105_p7, %p75_p0 }
   0xf   : > { %p924_p12 = por %p111_p8, %p81_p3  ;;  %s137_s26 = sand.u32 1, %s834_s14  }
  0x10   : > { %s1172_s24 = scalar_select %p920_p11, 1, 0 }
  0x11   : > { %s1173_s25 = scalar_select %p924_p12, 1, 0 }
  0x12   : > { %s643_s27 = sshll.u32 %s838_s15, 11  ;;  %s622_s28 = sshll.u32 %s137_s26, 7 }
  0x13   : > { %s933_s4 = scalar_lea.hbm %s1166_s2, %s643_s27  ;;  %s141_s5 = scalar_lea.vmem [#allocation2], %s622_s28 }
  0x14   : > { %s148_s6 = sshll.u32 %s141_s5, 4  ;;  %p937_p13 = pnand %p686_p10, %p909_p5  ;;  %s941_s6 = int_to_ptr.vmem [resolvable:$true] %s148_s6 }
  0x15   : > { %s943_s8 = scalar_lea.sflag [#allocation3], %s137_s26  ;;  %s746_s9 = scalar_lea.hbm %s933_s4, 2048 }
  0x16   : > { %p747_p0 = scmp.ne.s32.totalorder %s933_s4, %s746_s9  ;;  %p748_p1 = pneg %p937_p13 }
  0x17   : > { %s751_s17 = scalar_lea.hbm %s1166_s2, 4096  ;;  %p752_p4 = scmp.lt.s32.totalorder %s933_s4, %s1166_s2 }
  0x18   : > { %p749_p2 = pnand %p748_p1, %p747_p0  ;;  %p753_p5 = scmp.lt.s32.totalorder %s751_s17, %s746_s9 }
  0x1a   : > { %p750_p3 = pneg %p749_p2  ;;  %p754_p7 = por %p753_p5, %p752_p4 }
  0x1c   : > { %p755_p8 = pnand %p754_p7, %p750_p3 }
  0x1e   : > { %758 = shalt.err (!%p755_p8)
}
  0x1f   : > { %s759_s22 = scalar_lea.vmem %s941_s6, 2048  ;;  %s840_s26 = smov [#allocation2]  }
  0x20   : > { %p760_p10 = scmp.ne.s32.totalorder %s941_s6, %s759_s22  ;;  %s764_s27 = sshll.u32 %s840_s26, 4  ;;  %s765_s27 = int_to_ptr.vmem [resolvable:$false] %s764_s27 }
  0x21   : > { %s766_s28 = scalar_lea.vmem %s765_s27, 4096  ;;  %p767_p2 = scmp.lt.s32.totalorder %s941_s6, %s765_s27 }
  0x22   : > { %p762_p9 = pnand %p760_p10, %p748_p1  ;;  %p768_p12 = scmp.lt.s32.totalorder %s766_s28, %s759_s22 }
  0x24   : > { %p763_p0 = pneg %p762_p9  ;;  %p769_p11 = por %p768_p12, %p767_p2 }
  0x26   : > { %p770_p6 = pnand %p769_p11, %p763_p0 }
  0x28   : > { %773 = shalt.err (!%p770_p6)
}
  0x29   : > { %s841_s29 = smov 512   ;;  %s842_s30 = smov 32  }
  0x2a   : > { %681 = dma.hbm_to_vmem [thread:$0]  (!%p937_p13), %s933_s4, 2048, %s941_s6, %s943_s8, %s841_s29, %s841_s29, %s842_s30  }
  0x2b   : > { %p625_p9 = scmp.ge.s32.totalorder %s838_s15, 1  ;;  %p156_p1 = scmp.lt.s32.totalorder %s838_s15, 3 }
  0x2d   : > { %p157_p3 = pnand %p625_p9, %p156_p1 }
  0x2e   : > { %s967_s5 = sand.u32 (!%p157_p3), 1, %s830_s13   ;;  %p1175_p6 = scmp.ne.s32.totalorder (!%p157_p3), %s1171_s23, 0 }
  0x2f   : > { %160 = sbr.rel (%p157_p3) target bundleno = 904 (0x388), region = 32  ;;  %s626_s9 = sshll.u32 (!%p157_p3), %s967_s5, 7 }
  0x30   : > { %s163_s10 = scalar_lea.sflag (!%p157_p3), [#allocation3], %s967_s5  ;;  %s973_s11 = scalar_lea.vmem (!%p157_p3), [#allocation2], %s626_s9 }
  0x34   : > { %817 = dma.done.wait (%p1175_p6), %s163_s10, 2048  }
  0x35   : > { %819 = vsyncadd (%p1175_p6), %s163_s10, 4294965248  ;;  %v980_v0 = vld [vmem:[%s973_s11 + $0x60] sm:$0xff]  ;;  %v983_v1 = vld [vmem:[%s973_s11 + $0x68] sm:$0xff]  ;;  %v843_v40 = vmov 0.0   ;;  %vm844_vm0 = vmmov 0   ;;  %vm249_vm1 = vcmask 7168  }
  0x36   : > { %v986_v2 = vld [vmem:[%s973_s11 + $0x70] sm:$0xff]  ;;  %v244_v3 = vmax.f32 %v980_v0, %v983_v1  ;;  %v220_v4 = vadd.f32 %v983_v1, %v980_v0  ;;  %v993_v5 = vld [vmem:[%s973_s11 + $0x40] sm:$0xff]  ;;  %v996_v6 = vld [vmem:[%s973_s11 + $0x48] sm:$0xff]  ;;  %655 = vmatprep.subr.mxu0 %v843_v40  ;;  %663 = vmatprep.mubr.msk.f32.mxu0 %vm844_vm0, %v843_v40  ;;  %vm255_vm2 = vcmask 261120   ;;  %vm334_vm3 = vcmask 15360   ;;  %s845_s27 = smov 127  }
  0x37   : > { %v999_v7 = vld [vmem:[%s973_s11 + $0x78] sm:$0xff]  ;;  %v1002_v8 = vld [vmem:[%s973_s11 + $0x50] sm:$0xff]  ;;  %v215_v9 = vadd.f32 %v996_v6, %v993_v5  ;;  %v1007_v10 = vld [vmem:[%s973_s11 + $0x20] sm:$0xff]  ;;  %v239_v11 = vmax.f32 %v993_v5, %v996_v6  ;;  %vm347_vm4 = vcmask 1041408   ;;  %s1084_s28 = scalar_lea.vmem [#allocation5], %s626_s9  ;;  %s644_s29 = sshll.u32 %s891_s16, 11 }
  0x38   : > { %v245_v12 = vmax.f32 %v244_v3, %v986_v2  ;;  %v221_v13 = vadd.f32 %v220_v4, %v986_v2  ;;  %v1014_v14 = vld [vmem:[%s973_s11 + $0x58] sm:$0xff]  ;;  %v1017_v15 = vld [vmem:[%s973_s11 + $0x28] sm:$0xff]  ;;  %v1020_v16 = vld [vmem:[%s973_s11 + $0x30] sm:$0xff]  ;;  %s546_s30 = sshll.u32 %s1084_s28, 4  ;;  %s533_s16 = scalar_lea.sflag [#allocation4], %s967_s5  ;;  %s1113_s30 = int_to_ptr.vmem [resolvable:$true] %s546_s30 }
  0x39   : > { %v216_v17 = vadd.f32 %v215_v9, %v1002_v8  ;;  %v210_v18 = vadd.f32 %v1017_v15, %v1007_v10  ;;  %v1026_v19 = vld [vmem:[%s973_s11] sm:$0xff]  ;;  %v1029_v20 = vld [vmem:[%s973_s11 + $0x8] sm:$0xff]  ;;  %v1032_v21 = vld [vmem:[%s973_s11 + $0x10] sm:$0xff]  ;;  %v240_v27 = vmax.f32 %v239_v11, %v1002_v8  ;;  %v234_v28 = vmax.f32 %v1007_v10, %v1017_v15  ;;  %s774_s23 = scalar_lea.vmem %s1113_s30, 2048  ;;  %p1176_p12 = scmp.ne.s32.totalorder %s1172_s24, 0 }
  0x3a   : > { %v246_v22 = vmax.f32 %v245_v12, %v999_v7  ;;  %v222_v23 = vadd.f32 %v221_v13, %v999_v7  ;;  %v1037_v24 = vld [vmem:[%s973_s11 + $0x38] sm:$0xff]  ;;  %v205_v25 = vadd.f32 %v1029_v20, %v1026_v19  ;;  %v229_v31 = vmax.f32 %v1026_v19, %v1029_v20  ;;  %v254_v56 = vld [vmem:[%s1164_s0] sm:$0x3]  ;;  %v331_v62 = vld [vmem:[%s1165_s1 + $0x8] sm:$0xff]  ;;  %p775_p11 = scmp.ne.s32.totalorder %s1113_s30, %s774_s23  ;;  %s847_s4 = smov [#allocation5]  }
  0x3b   : > { %v211_v26 = vadd.f32 %v210_v18, %v1020_v16  ;;  %v217_v29 = vadd.f32 %v216_v17, %v1014_v14  ;;  %v1051_v33 = vld [vmem:[%s973_s11 + $0x18] sm:$0xff]  ;;  %v241_v34 = vmax.f32 %v240_v27, %v1014_v14  ;;  %v235_v36 = vmax.f32 %v234_v28, %v1020_v16  ;;  %v330_v58 = vld [vmem:[%s1165_s1] sm:$0xff]  ;;  %v332_v63 = vld [vmem:[%s1165_s1 + $0x10] sm:$0xff]  ;;  %s1111_s11 = scalar_lea.hbm %s1167_s3, %s644_s29  ;;  %s778_s6 = sshll.u32 %s847_s4, 4  ;;  %s779_s6 = int_to_ptr.vmem [resolvable:$false] %s778_s6 }
  0x3c   : > { %247 = vmax.xlane.f32.xlu1 %v246_v22  ;;  %223 = vadd.xlane.f32.xlu0 %v222_v23  ;;  %v206_v30 = vadd.f32 %v205_v25, %v1032_v21  ;;  %v230_v37 = vmax.f32 %v229_v31, %v1032_v21  ;;  %v333_v3 = vld [vmem:[%s1165_s1 + $0x18] sm:$0xff]  ;;  %v846_v13 = vmov 0   ;;  %p776_p13 = pnand %p775_p11, %p1176_p12  ;;  %s780_s7 = scalar_lea.vmem %s779_s6, 4096 }
  0x3d   : > { %v212_v32 = vadd.f32 %v211_v26, %v1037_v24  ;;  %v236_v38 = vmax.f32 %v235_v36, %v1037_v24  ;;  %668 = vmatprep.mubr.msk.f32.mxu1 %vm334_vm3, %v330_v58  ;;  %728 = vset.pattern.permute.xlu1 %v846_v13  ;;  %p781_p5 = scmp.lt.s32.totalorder %s1113_s30, %s779_s6  ;;  %p782_p7 = scmp.lt.s32.totalorder %s780_s7, %s774_s23 }
  0x3e   : > { %v207_v35 = vadd.f32 %v206_v30, %v1051_v33  ;;  %v231_v39 = vmax.f32 %v230_v37, %v1051_v33  ;;  %729 = vset.pattern.permute.xlu0 %v846_v13  ;;  %p777_p4 = pneg %p776_p13 }
  0x3f   : > { %p783_p8 = por %p782_p7, %p781_p5 }
  0x40   : > { %218 = vadd.xlane.f32.xlu0 %v217_v29  ;;  %213 = vadd.xlane.f32.xlu1 %v212_v32 }
  0x41   : > { %p784_p10 = pnand %p783_p8, %p777_p4 }
  0x44   : > { %242 = vmax.xlane.f32.xlu0 %v241_v34  ;;  %208 = vadd.xlane.f32.xlu1 %v207_v35 }
  0x48   : > { %237 = vmax.xlane.f32.xlu0 %v236_v38  ;;  %232 = vmax.xlane.f32.xlu1 %v231_v39 }
  0xc5   : > { %v248_v41 = vpop.xlane.xlu1 %247  ;;  %v224_v42 = vpop.xlane.xlu0 %223 }
  0xc6   : > { %v228_v43 = vmul.f32 0.001953125, %v224_v42 }
  0xc8   : > { %v253_v44 = vsel %vm249_vm1, %v228_v43, %v248_v41 }
  0xc9   : > { %656 = vmatpush3.msra.mxu0 %v253_v44  ;;  %v219_v45 = vpop.xlane.xlu0 %218  ;;  %v214_v46 = vpop.xlane.xlu1 %213 }
  0xca   : > { %657 = vmatprep.subr.mxu0 %v843_v40  ;;  %v227_v47 = vmul.f32 0.001953125, %v219_v45  ;;  %v226_v51 = vmul.f32 0.001953125, %v214_v46 }
  0xcd   : > { %v243_v48 = vpop.xlane.xlu0 %242  ;;  %v209_v49 = vpop.xlane.xlu1 %208 }
  0xce   : > { %v252_v50 = vsel %vm249_vm1, %v227_v47, %v243_v48  ;;  %v225_v52 = vmul.f32 0.001953125, %v209_v49 }
  0xcf   : > { %658 = vmatpush3.msra.mxu0 %v252_v50 }
  0xd0   : > { %659 = vmatprep.subr.mxu0 %v843_v40 }
  0xd1   : > { %v238_v53 = vpop.xlane.xlu0 %237  ;;  %v233_v54 = vpop.xlane.xlu1 %232 }
  0xd2   : > { %v251_v55 = vsel %vm249_vm1, %v226_v51, %v238_v53  ;;  %v250_v57 = vsel %vm249_vm1, %v225_v52, %v233_v54 }
  0xd3   : > { %660 = vmatpush3.msra.mxu0 %v251_v55 }
  0xd4   : > { %661 = vmatprep.subr.mxu0 %v843_v40 }
  0xd5   : > { %662 = vmatpush3.msra.mxu0 %v250_v57 }
  0xd6   : > { %664 = vmatmul.mubr.msk.f32.vlgmr.msra.gmra.mxu0 %vm255_vm2, %v254_v56 }
 0x196   : > { %v325_v59 = vpop.f32.mrf.mxu0 }
 0x197   : > { %v329_v60 = vmax.f32 %v325_v59, 0.0 }
 0x198   : > { %v665_v61 = vpop.f32.mrf.mxu0 }
 0x199   : > { %666 = vmatprep.subr.msk.mxu1 %vm347_vm4, %v329_v60 }
 0x19a   : > { %667 = vmatpush3.msk.msra.mxu1 %vm347_vm4, %v329_v60 }
 0x19b   : > { %669 = vmatmul.mubr.msk.f32.vlgmr.msra.gmra.mxu1 %vm334_vm3, %v331_v62 }
 0x19c   : > { %671 = vmatprep.mubr.msk.f32.mxu1 %vm334_vm3, %v332_v63 }
 0x19f   : > { %672 = vmatmul.mubr.msk.f32.gmra.mxu1 %vm334_vm3, %v333_v3 }
 0x25b   : > { %v670_v4 = vpop.f32.mrf.mxu1 }
 0x25c   : > { %442 = vrot.lane.b32.xlu1 %v670_v4, %s845_s27 }
 0x25d   : > { %v417_v9 = vpop.f32.mrf.mxu1 }
 0x25e   : > { %440 = vrot.lane.b32.xlu0 %v417_v9, %s845_s27 }
 0x25f   : > { %v673_v11 = vpop.f32.mrf.mxu1 }
 0x261   : > { %v427_v12 = vpop.f32.mrf.mxu1 }
 0x262   : > { %444 = vrot.lane.b32.xlu1 %v427_v12, %s845_s27 }
 0x266   : > { %446 = vrot.lane.b32.xlu1 %v673_v11, %s845_s27 }
 0x2ce   : > { %v443_v17 = vpop.permute.xlu1 %442 }
 0x2cf   : > { %v453_v18 = vadd.f32 %v670_v4, %v443_v17 }
 0x2d0   : > { %v441_v22 = vpop.permute.xlu0 %440 }
 0x2d1   : > { %v635_v23 = vmul.f32 -1.442695, %v453_v18  ;;  %v452_v25 = vadd.f32 %v441_v22, %v417_v9 }
 0x2d3   : > { %730 = vpow2.f32 %v635_v23  ;;  %v634_v26 = vmul.f32 -1.442695, %v452_v25 }
 0x2d4   : > { %v445_v27 = vpop.permute.xlu1 %444 }
 0x2d5   : > { %732 = vpow2.f32 %v634_v26  ;;  %v454_v28 = vadd.f32 %v445_v27, %v427_v12 }
 0x2d7   : > { %v636_v29 = vmul.f32 -1.442695, %v454_v28 }
 0x2d8   : > { %v447_v30 = vpop.permute.xlu1 %446 }
 0x2d9   : > { %734 = vpow2.f32 %v636_v29  ;;  %v455_v31 = vadd.f32 %v673_v11, %v447_v30 }
 0x2db   : > { %v637_v32 = vmul.f32 -1.442695, %v455_v31 }
 0x2dd   : > { %736 = vpow2.f32 %v637_v32 }
 0x2e0   : > { %v731_v34 = vpop.eup %730 }
 0x2e1   : > { %v469_v35 = vadd.f32 1.0, %v731_v34 }
 0x2e2   : > { %v733_v36 = vpop.eup %732 }
 0x2e3   : > { %738 = vrcp.f32 %v469_v35  ;;  %v468_v37 = vadd.f32 1.0, %v733_v36 }
 0x2e5   : > { %740 = vrcp.f32 %v468_v37 }
 0x2e6   : > { %v735_v38 = vpop.eup %734 }
 0x2e7   : > { %v470_v39 = vadd.f32 1.0, %v735_v38 }
 0x2e9   : > { %742 = vrcp.f32 %v470_v39 }
 0x2ea   : > { %v737_v40 = vpop.eup %736 }
 0x2eb   : > { %v471_v41 = vadd.f32 1.0, %v737_v40 }
 0x2ed   : > { %744 = vrcp.f32 %v471_v41 }
 0x2f0   : > { %v739_v42 = vpop.eup %738 }
 0x2f1   : > { %487 = vperm.xlu1 %728, %v739_v42  }
 0x2f2   : > { %v741_v43 = vpop.eup %740 }
 0x2f3   : > { %482 = vperm.xlu0 %729, %v741_v43  }
 0x2f6   : > { %v743_v44 = vpop.eup %742 }
 0x2f7   : > { %492 = vperm.xlu1 %728, %v743_v44  }
 0x2fa   : > { %v745_v45 = vpop.eup %744 }
 0x2fb   : > { %497 = vperm.xlu0 %729, %v745_v45  }
 0x36c   : > { %v488_v46 = vpop.permute.xlu1 %487 }
 0x36d   : > { %v504_v47 = vmul.f32 %v488_v46, %v1007_v10  ;;  %v505_v48 = vmul.f32 %v488_v46, %v1017_v15  ;;  %v506_v49 = vmul.f32 %v488_v46, %v1020_v16  ;;  %v507_v50 = vmul.f32 %v488_v46, %v1037_v24 }
 0x36e   : > { %v483_v51 = vpop.permute.xlu0 %482 }
 0x36f   : > { %520 = vst [vmem:[%s1084_s28 + $0x20] sm:$0xff] %v504_v47  ;;  %521 = vst [vmem:[%s1084_s28 + $0x28] sm:$0xff] %v505_v48  ;;  %v500_v10 = vmul.f32 %v483_v51, %v1026_v19  ;;  %v501_v15 = vmul.f32 %v483_v51, %v1029_v20  ;;  %v502_v16 = vmul.f32 %v483_v51, %v1032_v21 }
 0x370   : > { %522 = vst [vmem:[%s1084_s28 + $0x30] sm:$0xff] %v506_v49  ;;  %523 = vst [vmem:[%s1084_s28 + $0x38] sm:$0xff] %v507_v50  ;;  %v503_v24 = vmul.f32 %v483_v51, %v1051_v33 }
 0x371   : > { %516 = vst [vmem:[%s1084_s28] sm:$0xff] %v500_v10  ;;  %517 = vst [vmem:[%s1084_s28 + $0x8] sm:$0xff] %v501_v15 }
 0x372   : > { %518 = vst [vmem:[%s1084_s28 + $0x10] sm:$0xff] %v502_v16  ;;  %519 = vst [vmem:[%s1084_s28 + $0x18] sm:$0xff] %v503_v24  ;;  %v493_v52 = vpop.permute.xlu1 %492 }
 0x373   : > { %v508_v53 = vmul.f32 %v493_v52, %v993_v5  ;;  %v509_v54 = vmul.f32 %v493_v52, %v996_v6  ;;  %v510_v19 = vmul.f32 %v493_v52, %v1002_v8  ;;  %v511_v20 = vmul.f32 %v493_v52, %v1014_v14 }
 0x375   : > { %524 = vst [vmem:[%s1084_s28 + $0x40] sm:$0xff] %v508_v53  ;;  %525 = vst [vmem:[%s1084_s28 + $0x48] sm:$0xff] %v509_v54 }
 0x376   : > { %526 = vst [vmem:[%s1084_s28 + $0x50] sm:$0xff] %v510_v19  ;;  %527 = vst [vmem:[%s1084_s28 + $0x58] sm:$0xff] %v511_v20  ;;  %v498_v21 = vpop.permute.xlu0 %497 }
 0x377   : > { %v512_v5 = vmul.f32 %v498_v21, %v980_v0  ;;  %v513_v6 = vmul.f32 %v498_v21, %v983_v1  ;;  %v514_v8 = vmul.f32 %v498_v21, %v986_v2  ;;  %v515_v14 = vmul.f32 %v498_v21, %v999_v7 }
 0x379   : > { %528 = vst [vmem:[%s1084_s28 + $0x60] sm:$0xff] %v512_v5  ;;  %529 = vst [vmem:[%s1084_s28 + $0x68] sm:$0xff] %v513_v6 }
 0x37a   : > { %530 = vst [vmem:[%s1084_s28 + $0x70] sm:$0xff] %v514_v8  ;;  %531 = vst [vmem:[%s1084_s28 + $0x78] sm:$0xff] %v515_v14 }
 0x37b   : > { %787 = shalt.err (!%p784_p10)
}
 0x37c   : > { %s788_s8 = scalar_lea.hbm %s1111_s11, 2048  ;;  %s792_s20 = scalar_lea.hbm %s1167_s3, 4096 }
 0x37d   : > { %p789_p0 = scmp.ne.s32.totalorder %s1111_s11, %s788_s8  ;;  %p793_p1 = scmp.lt.s32.totalorder %s1111_s11, %s1167_s3 }
 0x37e   : > { %p794_p3 = scmp.lt.s32.totalorder %s792_s20, %s788_s8 }
 0x37f   : > { %p790_p2 = pnand %p789_p0, %p1176_p12 }
 0x380   : > { %p795_p6 = por %p794_p3, %p793_p1 }
 0x381   : > { %p791_p9 = pneg %p790_p2 }
 0x383   : > { %p796_p11 = pnand %p795_p6, %p791_p9 }
 0x385   : > { %799 = shalt.err (!%p796_p11)
}
 0x386   : > { %s848_s27 = smov 512   ;;  %s849_s28 = smov 32  }
 0x387   : > { %676 = dma.vmem_to_hbm [thread:$0]  (%p1176_p12), %s1113_s30, 2048, %s1111_s11, %s533_s16, %s848_s27, %s848_s27, %s849_s28  }
 0x388 PF: > { %s561_s29 = sand.u32 1, %s826_s12   ;;  %p1177_p13 = scmp.ne.s32.totalorder %s1173_s25, 0 }
 0x389   : > { %p1178_p4 = scmp.ge.s32.totalorder %s838_s15, 2  ;;  %s562_s9 = scalar_lea.sflag [#allocation4], %s561_s29 }
 0x38b   : > { %p683_p5 = pnand %p1178_p4, %p1177_p13 }
 0x38d   : > { %p684_p7 = pneg %p683_p5 }
 0x38f   : > { %821 = dma.done.wait (%p684_p7), %s562_s9, 2048  }
 0x390   : > { %823 = vsyncadd (%p684_p7), %s562_s9, 4294965248  ;;  %p16_p8 = scmp.ge.s32.totalorder %s895_s18, 4   ;;  %s1179_s12 = smov %s830_s13 }
 0x391   : > { %s1180_s13 = smov %s834_s14  ;;  %s1181_s14 = smov %s907_s21 }
 0x392   : > { %s1182_s15 = smov %s895_s18  ;;  %18 = sbr.rel (!%p16_p8) target bundleno = 5 (0x5), region = 77 }
 0x397   :  { %567 = vsyncpa [#allocation3], 1 }
 0x398   :  { %569 = vsyncpa [#allocation3 + $0x1], 1 }
 0x399   :  { %570 = vsyncpa [#allocation4], 1 }
 0x39a   :  { %572 = vsyncpa [#allocation4 + $0x1], 1 }

</bundles_post_ra>
